<compile_context>
chip_gen: v6e
topology: v6e:2x2x1
jax: 0.10.0
libtpu: 0.0.40
codegen_flags: <defaults>
</compile_context>

<pallas_src>
import jax
import jax.numpy as jnp
from jax import lax
from jax.experimental import pallas as pl
from jax.experimental.pallas import tpu as pltpu


# ---------------------------------------------------------------------------
# Pallas kernels
# ---------------------------------------------------------------------------

def _matmul_bias_relu_kernel(x_ref, w_ref, b_ref, o_ref):
    # x_ref: (rb, K_in) bf16 ; w_ref: (K_in, N_out) bf16 ; b_ref: (1, N_out) f32
    acc = jnp.dot(x_ref[...], w_ref[...], preferred_element_type=jnp.float32)
    acc = acc + b_ref[...]
    o_ref[...] = jnp.maximum(acc, 0.0).astype(o_ref.dtype)


def _fused_tail_kernel(g_ref, x_ref, mt_ref, mc_ref, bt_ref, bc_ref, o_ref):
    # Temporal_Block: relu(BN(conv_t(g)))  (conv+BN folded into mt/bt)
    gcn = jnp.dot(g_ref[...], mt_ref[...], preferred_element_type=jnp.float32) + bt_ref[...]
    gcn = jnp.maximum(gcn, 0.0)
    # cnn branch: relu(Dropout2d(BN(conv_c(x))))  (Dropout2d = identity at inference)
    cnn = jnp.dot(x_ref[...], mc_ref[...], preferred_element_type=jnp.float32) + bc_ref[...]
    cnn = jnp.maximum(cnn, 0.0)
    # Basic_Block final: relu(cnn + gcn)
    o_ref[...] = jnp.maximum(cnn + gcn, 0.0).astype(o_ref.dtype)


# ---------------------------------------------------------------------------
# pallas_call wrappers (row-blocked, lane-dense)
# ---------------------------------------------------------------------------

def _round_up(n, m):
    return ((n + m - 1) // m) * m


_COMPILER_PARAMS = pltpu.CompilerParams(
    dimension_semantics=("parallel",),
    # Re-derive the row tile / this limit for realistic sizes on v7x (64 MiB VMEM).
    vmem_limit_bytes=32 * 1024 * 1024,
)


def _row_tiling(rows, row_block):
    rb = min(row_block, _round_up(rows, 16))   # multiple of 16 (bf16 sublane packing)
    rows_p = _round_up(rows, rb)
    return rb, rows_p


def _matmul_bias_relu(x_rows, w, b, *, out_dtype, row_block):
    rows, k_in = x_rows.shape
    n_out = w.shape[1]
    rb, rows_p = _row_tiling(rows, row_block)
    if rows_p != rows:
        x_rows = jnp.pad(x_rows, ((0, rows_p - rows), (0, 0)))
    out = pl.pallas_call(
        _matmul_bias_relu_kernel,
        out_shape=jax.ShapeDtypeStruct((rows_p, n_out), out_dtype),
        grid_spec=pltpu.PrefetchScalarGridSpec(
            num_scalar_prefetch=0,
            grid=(rows_p // rb,),
            in_specs=[
                pl.BlockSpec((rb, k_in), lambda r: (r, 0)),
                pl.BlockSpec((k_in, n_out), lambda r: (0, 0)),   # resident
                pl.BlockSpec((1, n_out), lambda r: (0, 0)),      # resident
            ],
            out_specs=pl.BlockSpec((rb, n_out), lambda r: (r, 0)),
        ),
        compiler_params=_COMPILER_PARAMS,
    )(x_rows, w, b)
    return out[:rows]


def _fused_tcn_cnn(g_cols, x_cols, mt, mc, bt, bc, *, row_block):
    rows, kg = g_cols.shape
    kx = x_cols.shape[1]
    n_out = mt.shape[1]
    rb, rows_p = _row_tiling(rows, row_block)
    if rows_p != rows:
        g_cols = jnp.pad(g_cols, ((0, rows_p - rows), (0, 0)))
        x_cols = jnp.pad(x_cols, ((0, rows_p - rows), (0, 0)))
    out = pl.pallas_call(
        _fused_tail_kernel,
        out_shape=jax.ShapeDtypeStruct((rows_p, n_out), jnp.float32),
        grid_spec=pltpu.PrefetchScalarGridSpec(
            num_scalar_prefetch=0,
            grid=(rows_p // rb,),
            in_specs=[
                pl.BlockSpec((rb, kg), lambda r: (r, 0)),
                pl.BlockSpec((rb, kx), lambda r: (r, 0)),
                pl.BlockSpec((kg, n_out), lambda r: (0, 0)),
                pl.BlockSpec((kx, n_out), lambda r: (0, 0)),
                pl.BlockSpec((1, n_out), lambda r: (0, 0)),
                pl.BlockSpec((1, n_out), lambda r: (0, 0)),
            ],
            out_specs=pl.BlockSpec((rb, n_out), lambda r: (r, 0)),
        ),
        compiler_params=_COMPILER_PARAMS,
    )(g_cols, x_cols, mt, mc, bt, bc)
    return out[:rows]


# ---------------------------------------------------------------------------
# Basic_Block forward (wrapper: BN folding, effective weights, im2col plumbing)
# ---------------------------------------------------------------------------

def basic_block_forward(x, A, p, *, max_graph_distance, temporal_window_size,
                        stride, max_frame, row_block=256):
    """x: (N, C, T, V) f32; A: (>=K, V, V); p: parameter dict. Returns (N, C2, T_out, V)."""
    N, C, T, V = x.shape
    K = max_graph_distance + 1
    C2 = p["Wt"].shape[0]
    CV = C * V
    OV = C2 * V
    eps = 1e-5

    def bn_fold(gamma, beta, mean, var):
        s = gamma / jnp.sqrt(var + eps)
        return s, beta - mean * s

    s1, t1 = bn_fold(*p["bn1"])   # (C,)  Spatial_Block BN
    s2, t2 = bn_fold(*p["bn2"])   # (C2,) Temporal_Block BN
    s3, t3 = bn_fold(*p["bn3"])   # (C2,) cnn-branch BN

    # --- Stage 1: Spatial_Block == relu(BN1(SpatialGraphConv(x, A))) as ONE matmul ---
    Wg = p["Wg"].reshape(K, C, C)        # [k, c_out, c_in]  (k-major, matches view(n,K,C,t,v))
    bg = p["bg"].reshape(K, C)
    Ak = A[:K]
    # E[i*V+v, c*V+w] = sum_k Wg[k,c,i] * A[k,v,w]
    E = jnp.einsum("kci,kvw->ivcw", Wg, Ak).reshape(CV, CV)
    B = jnp.einsum("kc,kvw->cw", bg, Ak).reshape(CV)
    s1_l = jnp.repeat(s1, V)
    t1_l = jnp.repeat(t1, V)
    E1 = (E * s1_l[None, :]).astype(jnp.bfloat16)
    B1 = (B * s1_l + t1_l).astype(jnp.float32)[None, :]

    x_rows = jnp.transpose(x, (0, 2, 1, 3)).reshape(N * T, CV)      # lane = c*V + v
    g_rows = _matmul_bias_relu(x_rows.astype(jnp.bfloat16), E1, B1,
                               out_dtype=jnp.bfloat16, row_block=row_block)  # (N*T, C*V)

    # --- Stage 2: im2col (layout plumbing) for temporal conv and cnn branch ---
    p_t = (temporal_window_size - 1) // 2
    T_t = (T + 2 * p_t - temporal_window_size) // stride + 1
    p_c = max_frame % 2
    T_c = (T + 2 * p_c - 2) // 2 + 1
    assert T_t == T_c, "Basic_Block requires cnn/tcn temporal lengths to match"
    T_out = T_t

    g3 = g_rows.reshape(N, T, CV)
    g3p = jnp.pad(g3, ((0, 0), (p_t, p_t), (0, 0)))
    g_cols = jnp.concatenate(
        [g3p[:, dt::stride, :][:, :T_out, :] for dt in range(temporal_window_size)],
        axis=-1).reshape(N * T_out, temporal_window_size * CV)

    x3 = jnp.transpose(x, (0, 2, 1, 3)).reshape(N, T, CV)
    x3p = jnp.pad(x3, ((0, 0), (p_c, p_c), (0, 0)))
    x_cols = jnp.concatenate(
        [x3p[:, dc::2, :][:, :T_out, :] for dc in range(2)],
        axis=-1).reshape(N * T_out, 2 * CV).astype(jnp.bfloat16)

    # --- effective (block-diagonal over V) weights, BN folded ---
    I_V = jnp.eye(V, dtype=jnp.float32)
    Wt = p["Wt"][..., 0]                 # (C2, C, tws)
    Mt = jnp.concatenate(
        [jnp.kron(Wt[:, :, dt].T, I_V) for dt in range(temporal_window_size)], axis=0)
    Wc = p["Wc"][..., 0]                 # (C2, C, 2)
    Mc = jnp.concatenate([jnp.kron(Wc[:, :, dc].T, I_V) for dc in range(2)], axis=0)

    s2_l = jnp.repeat(s2, V); t2_l = jnp.repeat(t2, V)
    s3_l = jnp.repeat(s3, V); t3_l = jnp.repeat(t3, V)
    Mt1 = (Mt * s2_l[None, :]).astype(jnp.bfloat16)                      # (tws*CV, OV)
    Bt1 = (jnp.repeat(p["bt"], V) * s2_l + t2_l).astype(jnp.float32)[None, :]
    Mc1 = (Mc * s3_l[None, :]).astype(jnp.bfloat16)                      # (2*CV, OV)
    Bc1 = (jnp.repeat(p["bc"], V) * s3_l + t3_l).astype(jnp.float32)[None, :]

    out_rows = _fused_tcn_cnn(g_cols, x_cols, Mt1, Mc1, Bt1, Bc1,
                              row_block=row_block)                       # (N*T_out, OV) f32

    return out_rows.reshape(N, T_out, C2, V).transpose(0, 2, 1, 3)       # (N, C2, T_out, V)


# ---------------------------------------------------------------------------
# Pure-JAX reference (mirrors the PyTorch forward, eval mode)
# ---------------------------------------------------------------------------

def _bn_eval(x, gamma, beta, mean, var, eps=1e-5):
    inv = gamma / jnp.sqrt(var + eps)
    return (x - mean[None, :, None, None]) * inv[None, :, None, None] + beta[None, :, None, None]


def reference_basic_block(x, A, p, *, max_graph_distance, temporal_window_size,
                          stride, max_frame):
    N, C, T, V = x.shape
    K = max_graph_distance + 1

    # Spatial_Block (residual=False): relu(BN(SpatialGraphConv(x, A)))
    h = jnp.einsum("nitv,oi->notv", x, p["Wg"]) + p["bg"][None, :, None, None]
    h = h.reshape(N, K, C, T, V)
    y = jnp.einsum("nkctv,kvw->nctw", h, A[:K])
    g = jax.nn.relu(_bn_eval(y, *p["bn1"]))

    # Temporal_Block (residual=False): relu(BN(Conv2d((tws,1),(stride,1))(g)))
    p_t = (temporal_window_size - 1) // 2
    zt = lax.conv_general_dilated(
        g, p["Wt"], window_strides=(stride, 1), padding=((p_t, p_t), (0, 0)),
        dimension_numbers=("NCHW", "OIHW", "NCHW")) + p["bt"][None, :, None, None]
    gcn = jax.nn.relu(_bn_eval(zt, *p["bn2"]))

    # cnn branch: relu(Dropout2d(BN(Conv2d((2,1),(2,1))(x))))  (dropout = identity at eval)
    p_c = max_frame % 2
    zc = lax.conv_general_dilated(
        x, p["Wc"], window_strides=(2, 1), padding=((p_c, p_c), (0, 0)),
        dimension_numbers=("NCHW", "OIHW", "NCHW")) + p["bc"][None, :, None, None]
    cnn_o = jax.nn.relu(_bn_eval(zc, *p["bn3"]))

    return jax.nn.relu(cnn_o + gcn)


# ---------------------------------------------------------------------------

if __name__ == "__main__":
    # Small deterministic config (C*V = 128 lanes, C2*V = 256 lanes).
    N, C, T, V = 2, 8, 64, 16
    C2 = 16
    max_graph_distance = 2
    temporal_window_size = 3
    stride = 2
    max_frame = 300            # only enters via cnn padding = max_frame % 2 (= 0)
    K = max_graph_distance + 1

    ks = jax.random.split(jax.random.PRNGKey(0), 12)
    x = jax.random.normal(ks[0], (N, C, T, V), dtype=jnp.float32)
    A = jax.random.uniform(ks[1], (K, V, V), dtype=jnp.float32)

    def bn_params(k, ch):
        k1, k2, k3, k4 = jax.random.split(k, 4)
        gamma = jax.random.uniform(k1, (ch,), minval=0.5, maxval=1.5)
        beta = jax.random.normal(k2, (ch,)) * 0.1
        mean = jax.random.normal(k3, (ch,)) * 0.1
        var = jax.random.uniform(k4, (ch,), minval=0.5, maxval=1.5)
        return gamma, beta, mean, var

    params = {
        "Wg": jax.random.normal(ks[2], (K * C, C), dtype=jnp.float32) * 0.1,   # 1x1 conv, (K*C, C)
        "bg": jax.random.normal(ks[3], (K * C,), dtype=jnp.float32) * 0.1,
        "Wt": jax.random.normal(ks[4], (C2, C, temporal_window_size, 1), dtype=jnp.float32) * 0.1,
        "bt": jax.random.normal(ks[5], (C2,), dtype=jnp.float32) * 0.1,
        "Wc": jax.random.normal(ks[6], (C2, C, 2, 1), dtype=jnp.float32) * 0.1,
        "bc": jax.random.normal(ks[7], (C2,), dtype=jnp.float32) * 0.1,
        "bn1": bn_params(ks[8], C),
        "bn2": bn_params(ks[9], C2),
        "bn3": bn_params(ks[10], C2),
    }

    out = basic_block_forward(
        x, A, params, max_graph_distance=max_graph_distance,
        temporal_window_size=temporal_window_size, stride=stride, max_frame=max_frame)
    out = jax.block_until_ready(out)

    ref = reference_basic_block(
        x, A, params, max_graph_distance=max_graph_distance,
        temporal_window_size=temporal_window_size, stride=stride, max_frame=max_frame)

    T_out = (T + 2 * ((temporal_window_size - 1) // 2) - temporal_window_size) // stride + 1
    assert out.shape == (N, C2, T_out, V), out.shape

    # bf16 matmul inputs with f32 accumulation -> compare with a bf16-appropriate tolerance.
    err = float(jnp.max(jnp.abs(out - ref)))
    scale = float(jnp.max(jnp.abs(ref)))
    assert err <= 2e-2 + 5e-2 * scale, f"mismatch vs reference: max_err={err}, max_ref={scale}"

    print("KERNEL_OK")
</pallas_src>

<mosaic_0001>
module attributes {stable_mosaic.version = 11 : i64} {
  func.func @_matmul_bias_relu_kernel(%arg0: i32, %arg1: memref<128x128xbf16, #tpu.memory_space<vmem>>, %arg2: memref<128x128xbf16, #tpu.memory_space<vmem>>, %arg3: memref<1x128xf32, #tpu.memory_space<vmem>>, %arg4: memref<128x128xbf16, #tpu.memory_space<vmem>>) attributes {dimension_semantics = [#tpu.dimension_semantics<parallel>], iteration_bounds = array<i64: 1>, scalar_prefetch = 0 : i64, scratch_operands = 0 : i64, tpu.core_type = #tpu.core_type<tc>, window_params = [{transform_indices = @transform_0, window_bounds = array<i64: 128, 128>}, {pipeline_mode = #tpu.pipeline_mode<synchronous>, transform_indices = @transform_1, window_bounds = array<i64: 128, 128>}, {pipeline_mode = #tpu.pipeline_mode<synchronous>, transform_indices = @transform_2, window_bounds = array<i64: 1, 128>}, {transform_indices = @transform_3, window_bounds = array<i64: 128, 128>}]} {
    %c0 = arith.constant 0 : index
    %c0_0 = arith.constant 0 : index
    %0 = vector.load %arg1[%c0, %c0_0] : memref<128x128xbf16, #tpu.memory_space<vmem>>, vector<128x128xbf16>
    %c0_1 = arith.constant 0 : index
    %c0_2 = arith.constant 0 : index
    %1 = vector.load %arg2[%c0_1, %c0_2] : memref<128x128xbf16, #tpu.memory_space<vmem>>, vector<128x128xbf16>
    %cst = arith.constant dense<0.000000e+00> : vector<128x128xf32>
    %2 = tpu.matmul %0, %1, %cst {dimension_numbers = #tpu.dot_dimension_numbers<[1], [0], [0], [1], [0, 0, 1, 1], [], []>} : vector<128x128xbf16>, vector<128x128xbf16>, vector<128x128xf32> -> vector<128x128xf32>
    %c0_3 = arith.constant 0 : index
    %c0_4 = arith.constant 0 : index
    %3 = vector.load %arg3[%c0_3, %c0_4] : memref<1x128xf32, #tpu.memory_space<vmem>>, vector<1x128xf32>
    %4 = vector.broadcast %3 : vector<1x128xf32> to vector<128x128xf32>
    %5 = arith.addf %2, %4 : vector<128x128xf32>
    %cst_5 = arith.constant 0.000000e+00 : f32
    %6 = vector.broadcast %cst_5 : f32 to vector<128x128xf32>
    %7 = arith.maximumf %5, %6 : vector<128x128xf32>
    %8 = arith.truncf %7 : vector<128x128xf32> to vector<128x128xbf16>
    %c0_6 = arith.constant 0 : index
    %c0_7 = arith.constant 0 : index
    %9 = vector.load %arg4[%c0_6, %c0_7] : memref<128x128xbf16, #tpu.memory_space<vmem>>, vector<128x128xbf16>
    tpu.vector_store %arg4[%c0_6, %c0_7], %8 {strides = array<i32>} : memref<128x128xbf16, #tpu.memory_space<vmem>>, vector<128x128xbf16>,
    return
  }
  func.func @transform_0(%arg0: i32) -> (i32, i32) {
    %c0_i32 = arith.constant 0 : i32
    %c0_i32_0 = arith.constant 0 : i32
    return %arg0, %c0_i32 : i32, i32
  }
  func.func @transform_1(%arg0: i32) -> (i32, i32) {
    %c0_i32 = arith.constant 0 : i32
    %c0_i32_0 = arith.constant 0 : i32
    %c0_i32_1 = arith.constant 0 : i32
    return %c0_i32, %c0_i32_0 : i32, i32
  }
  func.func @transform_2(%arg0: i32) -> (i32, i32) {
    %c0_i32 = arith.constant 0 : i32
    %c0_i32_0 = arith.constant 0 : i32
    %c0_i32_1 = arith.constant 0 : i32
    return %c0_i32, %c0_i32_0 : i32, i32
  }
  func.func @transform_3(%arg0: i32) -> (i32, i32) {
    %c0_i32 = arith.constant 0 : i32
    %c0_i32_0 = arith.constant 0 : i32
    return %arg0, %c0_i32 : i32, i32
  }
}

</mosaic_0001>

<bundles_post_ra>
// kernel: tpu_custom_call.1
= control target key start
LH: loop header
LB: loop body
LE: loop exit
PB: predicated region body
PF: predicated region fallthrough
CT: control target
= control target key end

     0   :  { %8 = vsyncpa [#allocation3], 0  ;;  %s683_s0 = inlined_call_operand.hbm [shape: bf16[128,128], index: 0, kind: input, shape index: {}]   ;;  %s684_s1 = inlined_call_operand.hbm [shape: bf16[128,128], index: 1, kind: input, shape index: {}]   ;;  %s685_s2 = inlined_call_operand.vmem [shape: f32[1,128], index: 2, kind: input, shape index: {}]   ;;  %s686_s3 = inlined_call_operand.hbm [shape: bf16[128,128], index: 3, kind: output, shape index: {}]  }
   0x1   :  { %9 = vsyncpa [#allocation6], 0 }
   0x2   :  { %10 = vsyncpa [#allocation4], 0  ;;  %s637_s12 = smov [#allocation2]  }
   0x3   :  { %s16_s13 = sshll.u32 %s637_s12, 4  ;;  %s17_s13 = int_to_ptr.vmem [resolvable:$true] %s16_s13 }
   0x4   :  { %s579_s14 = scalar_lea.vmem %s17_s13, 1024  ;;  %p584_p1 = scmp.lt.s32.totalorder %s17_s13, %s17_s13 }
   0x5   :  { %p580_p0 = scmp.ne.s32.totalorder %s17_s13, %s579_s14  ;;  %p585_p2 = scmp.lt.s32.totalorder %s579_s14, %s579_s14 }
   0x7   :  { %p586_p3 = por %p585_p2, %p584_p1 }
   0x9   :  { %p587_p4 = pnand %p586_p3, %p580_p0 }
   0xb   :  { %590 = shalt.err (!%p587_p4)
}
   0xc   :  { %s638_s15 = smov 64   ;;  %s639_s16 = smov 4  }
   0xd   :  { %22 = dma.hbm_to_vmem [thread:$0]  %s683_s0, 1024, %s17_s13, [#allocation3], %s638_s15, %s638_s15, %s639_s16  }
   0xe   :  { %s640_s19 = smov [#allocation5]  }
   0xf   :  { %s28_s20 = sshll.u32 %s640_s19, 4  ;;  %s29_s20 = int_to_ptr.vmem [resolvable:$true] %s28_s20 }
  0x10   :  { %s599_s21 = scalar_lea.vmem %s29_s20, 1024  ;;  %p604_p6 = scmp.lt.s32.totalorder %s29_s20, %s29_s20 }
  0x11   :  { %p600_p5 = scmp.ne.s32.totalorder %s29_s20, %s599_s21  ;;  %p605_p7 = scmp.lt.s32.totalorder %s599_s21, %s599_s21 }
  0x13   :  { %p606_p8 = por %p605_p7, %p604_p6 }
  0x15   :  { %p607_p9 = pnand %p606_p8, %p600_p5 }
  0x17   :  { %610 = shalt.err (!%p607_p9)
}
  0x18   :  { %34 = dma.hbm_to_vmem [thread:$0]  %s684_s1, 1024, %s29_s20, [#allocation6], %s638_s15, %s638_s15, %s639_s16  }
  0x19   :  { %631 = dma.done.wait [#allocation3], 1024  }
  0x1a   :  { %632 = vsyncadd [#allocation3], 4294966272 }
  0x1b   :  { %633 = dma.done.wait [#allocation6], 1024  }
  0x1c   :  { %634 = vsyncadd [#allocation6], 4294966272  ;;  %v555_v0 = vld [vmem:[#allocation5 + $0x38] sm:$0xff]   ;;  %v556_v1 = vld [vmem:[#allocation5 + $0x30] sm:$0xff]  }
  0x1d   :  { %502 = vmatprep.subr.bf16.mxu0 %v555_v0  ;;  %534 = vmatprep.subr.bf16.mxu1 %v555_v0  ;;  %v557_v2 = vld [vmem:[#allocation5 + $0x28] sm:$0xff]   ;;  %v558_v3 = vld [vmem:[#allocation5 + $0x20] sm:$0xff]   ;;  %v559_v6 = vld [vmem:[#allocation5 + $0x18] sm:$0xff]  }
  0x1e   :  { %503 = vmatpush3.bf16.msra.mxu0 %v555_v0  ;;  %542 = vmatpush3.bf16.msra.mxu1 %v555_v0  ;;  %v563_v4 = vld [vmem:[#allocation2] sm:$0xff]   ;;  %v560_v7 = vld [vmem:[#allocation5 + $0x10] sm:$0xff]   ;;  %v561_v8 = vld [vmem:[#allocation5 + $0x8] sm:$0xff]  }
  0x1f   :  { %504 = vmatprep.subr.bf16.mxu0 %v556_v1  ;;  %535 = vmatprep.subr.bf16.mxu1 %v556_v1  ;;  %v564_v5 = vld [vmem:[#allocation2 + $0x20] sm:$0xff]   ;;  %v565_v10 = vld [vmem:[#allocation2 + $0x8] sm:$0xff]   ;;  %v567_v12 = vld [vmem:[#allocation2 + $0x10] sm:$0xff]  }
  0x20   :  { %518 = vmatprep.mubr.bf16.mxu0 %v563_v4  ;;  %526 = vmatprep.mubr.bf16.mxu1 %v564_v5  ;;  %v562_v9 = vld [vmem:[#allocation5] sm:$0xff]   ;;  %v566_v11 = vld [vmem:[#allocation2 + $0x28] sm:$0xff]   ;;  %v568_v13 = vld [vmem:[#allocation2 + $0x30] sm:$0xff]  }
  0x21   :  { %v569_v14 = vld [vmem:[#allocation2 + $0x18] sm:$0xff]   ;;  %v390_v16 = vld [vmem:[%s685_s2] ss:$0 sm:$0xff]  ;;  %s641_s2 = smov [#allocation7]  }
  0x22   :  { %505 = vmatpush3.bf16.msra.mxu0 %v556_v1  ;;  %543 = vmatpush3.bf16.msra.mxu1 %v556_v1  ;;  %v570_v15 = vld [vmem:[#allocation2 + $0x38] sm:$0xff]   ;;  %s377_s24 = sshll.u32 %s641_s2, 4  ;;  %s378_s24 = int_to_ptr.vmem [resolvable:$true] %s377_s24 }
  0x23   :  { %506 = vmatprep.subr.bf16.mxu0 %v557_v2  ;;  %536 = vmatprep.subr.bf16.mxu1 %v557_v2  ;;  %s611_s25 = scalar_lea.vmem %s378_s24, 1024  ;;  %p616_p11 = scmp.lt.s32.totalorder %s378_s24, %s378_s24 }
  0x24   :  { %p612_p10 = scmp.ne.s32.totalorder %s378_s24, %s611_s25  ;;  %p617_p12 = scmp.lt.s32.totalorder %s611_s25, %s611_s25 }
  0x26   :  { %507 = vmatpush3.bf16.msra.mxu0 %v557_v2  ;;  %544 = vmatpush3.bf16.msra.mxu1 %v557_v2  ;;  %p618_p13 = por %p617_p12, %p616_p11 }
  0x27   :  { %508 = vmatprep.subr.bf16.mxu0 %v558_v3  ;;  %537 = vmatprep.subr.bf16.mxu1 %v558_v3 }
  0x28   :  { %p619_p0 = pnand %p618_p13, %p612_p10 }
  0x2a   :  { %509 = vmatpush3.bf16.msra.mxu0 %v558_v3  ;;  %545 = vmatpush3.bf16.msra.mxu1 %v558_v3 }
  0x2b   :  { %510 = vmatprep.subr.bf16.mxu0 %v559_v6  ;;  %538 = vmatprep.subr.bf16.mxu1 %v559_v6 }
  0x2e   :  { %511 = vmatpush3.bf16.msra.mxu0 %v559_v6  ;;  %546 = vmatpush3.bf16.msra.mxu1 %v559_v6 }
  0x2f   :  { %512 = vmatprep.subr.bf16.mxu0 %v560_v7  ;;  %539 = vmatprep.subr.bf16.mxu1 %v560_v7 }
  0x32   :  { %513 = vmatpush3.bf16.msra.mxu0 %v560_v7  ;;  %547 = vmatpush3.bf16.msra.mxu1 %v560_v7 }
  0x33   :  { %514 = vmatprep.subr.bf16.mxu0 %v561_v8  ;;  %540 = vmatprep.subr.bf16.mxu1 %v561_v8 }
  0x36   :  { %515 = vmatpush3.bf16.msra.mxu0 %v561_v8  ;;  %548 = vmatpush3.bf16.msra.mxu1 %v561_v8 }
  0x37   :  { %516 = vmatprep.subr.bf16.mxu0 %v562_v9  ;;  %541 = vmatprep.subr.bf16.mxu1 %v562_v9 }
  0x3a   :  { %517 = vmatpush3.bf16.msra.mxu0 %v562_v9  ;;  %549 = vmatpush3.bf16.msra.mxu1 %v562_v9 }
  0x3d   :  { %519 = vmatmul.mubr.bf16.vlgmr.msra.gmra.mxu0 %v565_v10  ;;  %527 = vmatmul.mubr.bf16.vlgmr.msra.gmra.mxu1 %v566_v11 }
  0x3e   :  { %522 = vmatprep.mubr.bf16.mxu0 %v567_v12  ;;  %530 = vmatprep.mubr.bf16.mxu1 %v568_v13 }
  0x45   :  { %523 = vmatmul.mubr.bf16.gmra.mxu0 %v569_v14  ;;  %531 = vmatmul.mubr.bf16.gmra.mxu1 %v570_v15 }
  0xfd   :  { %v520_v17 = vpop.f32.mrf.mxu0  ;;  %v528_v18 = vpop.f32.mrf.mxu1 }
  0xfe   :  { %v222_v19 = vadd.f32 %v520_v17, %v390_v16  ;;  %v254_v20 = vadd.f32 %v528_v18, %v390_v16 }
  0xff   :  { %v213_v21 = vpop.f32.mrf.mxu0  ;;  %v245_v22 = vpop.f32.mrf.mxu1 }
 0x100   :  { %v214_v23 = vadd.f32 %v390_v16, %v213_v21  ;;  %v246_v24 = vadd.f32 %v390_v16, %v245_v22  ;;  %v278_v29 = vmax.f32 %v222_v19, 0.0  ;;  %v286_v30 = vmax.f32 %v254_v20, 0.0 }
 0x101   :  { %v521_v25 = vpop.f32.mrf.mxu0  ;;  %v529_v26 = vpop.f32.mrf.mxu1 }
 0x102   :  { %v225_v27 = vadd.f32 %v521_v25, %v390_v16  ;;  %v257_v28 = vadd.f32 %v529_v26, %v390_v16  ;;  %v276_v37 = vmax.f32 %v214_v23, 0.0  ;;  %v284_v38 = vmax.f32 %v246_v24, 0.0 }
 0x103   :  { %v216_v31 = vpop.f32.mrf.mxu0  ;;  %v248_v32 = vpop.f32.mrf.mxu1 }
 0x104   :  { %v279_v33 = vmax.f32 %v225_v27, 0.0  ;;  %v287_v34 = vmax.f32 %v257_v28, 0.0  ;;  %v217_v35 = vadd.f32 %v390_v16, %v216_v31  ;;  %v249_v36 = vadd.f32 %v390_v16, %v248_v32 }
 0x105   :  { %v524_v39 = vpop.f32.mrf.mxu0  ;;  %v532_v40 = vpop.f32.mrf.mxu1 }
 0x106   :  { %v447_v41 = vpack.c.bf16 %v279_v33, %v278_v29  ;;  %v467_v42 = vpack.c.bf16 %v287_v34, %v286_v30  ;;  %v277_v43 = vmax.f32 %v217_v35, 0.0  ;;  %v285_v44 = vmax.f32 %v249_v36, 0.0 }
 0x107   :  { %v238_v45 = vadd.f32 %v524_v39, %v390_v16  ;;  %v270_v46 = vadd.f32 %v532_v40, %v390_v16  ;;  %v229_v47 = vpop.f32.mrf.mxu0  ;;  %v261_v48 = vpop.f32.mrf.mxu1 }
 0x108   :  { %479 = vst [vmem:[#allocation7 + $0x8] sm:$0xff] %v447_v41   ;;  %483 = vst [vmem:[#allocation7 + $0x28] sm:$0xff] %v467_v42   ;;  %v442_v49 = vpack.c.bf16 %v277_v43, %v276_v37  ;;  %v462_v50 = vpack.c.bf16 %v285_v44, %v284_v38  ;;  %v230_v51 = vadd.f32 %v390_v16, %v229_v47 }
 0x109   :  { %v262_v52 = vadd.f32 %v390_v16, %v261_v48  ;;  %v525_v53 = vpop.f32.mrf.mxu0  ;;  %v533_v54 = vpop.f32.mrf.mxu1  ;;  %v282_v57 = vmax.f32 %v238_v45, 0.0  ;;  %v290_v58 = vmax.f32 %v270_v46, 0.0 }
 0x10a   :  { %443 = vst [vmem:[#allocation7] sm:$0xff] %v442_v49   ;;  %482 = vst [vmem:[#allocation7 + $0x20] sm:$0xff] %v462_v50   ;;  %v241_v55 = vadd.f32 %v525_v53, %v390_v16  ;;  %v273_v56 = vadd.f32 %v533_v54, %v390_v16  ;;  %v280_v1 = vmax.f32 %v230_v51, 0.0 }
 0x10b   :  { %v232_v59 = vpop.f32.mrf.mxu0  ;;  %v264_v60 = vpop.f32.mrf.mxu1  ;;  %v288_v2 = vmax.f32 %v262_v52, 0.0 }
 0x10c   :  { %v283_v61 = vmax.f32 %v241_v55, 0.0  ;;  %v291_v62 = vmax.f32 %v273_v56, 0.0  ;;  %v233_v63 = vadd.f32 %v390_v16, %v232_v59  ;;  %v265_v0 = vadd.f32 %v390_v16, %v264_v60 }
 0x10e   :  { %v457_v3 = vpack.c.bf16 %v283_v61, %v282_v57  ;;  %v477_v4 = vpack.c.bf16 %v291_v62, %v290_v58  ;;  %v281_v5 = vmax.f32 %v233_v63, 0.0  ;;  %v289_v6 = vmax.f32 %v265_v0, 0.0 }
 0x110   :  { %481 = vst [vmem:[#allocation7 + $0x18] sm:$0xff] %v457_v3   ;;  %485 = vst [vmem:[#allocation7 + $0x38] sm:$0xff] %v477_v4   ;;  %v452_v7 = vpack.c.bf16 %v281_v5, %v280_v1  ;;  %v472_v8 = vpack.c.bf16 %v289_v6, %v288_v2 }
 0x112   :  { %480 = vst [vmem:[#allocation7 + $0x10] sm:$0xff] %v452_v7   ;;  %484 = vst [vmem:[#allocation7 + $0x30] sm:$0xff] %v472_v8  }
 0x113   :  { %622 = shalt.err (!%p619_p0)
}
 0x114   :  { %383 = dma.vmem_to_hbm [thread:$0]  %s378_s24, 1024, %s686_s3, [#allocation4], %s638_s15, %s638_s15, %s639_s16  }
 0x115   :  { %635 = dma.done.wait [#allocation4], 1024  }
 0x116   :  { %636 = vsyncadd [#allocation4], 4294966272 }
 0x117   :  { %387 = vsyncpa [#allocation3], 1 }
 0x118   :  { %388 = vsyncpa [#allocation6], 1 }
 0x119   :  { %389 = vsyncpa [#allocation4], 1 }

</bundles_post_ra>
